<compile_context>
chip_gen: v7x
topology: tpu7x:2x2x1
jax: 0.10.0
libtpu: 0.0.40
codegen_flags: <defaults>
</compile_context>

<pallas_src>
import math
import jax
import jax.numpy as jnp
from jax.experimental import pallas as pl
from jax.experimental.pallas import tpu as pltpu


# ---------------------------------------------------------------------------
# Init (mirrors __init__ / register_buffer): build pe once, flatten once.
# ---------------------------------------------------------------------------
def _build_pe(d_model: int, max_len: int = 5000) -> jnp.ndarray:
    """Sinusoidal positional-encoding buffer, shape (1, max_len, d_model), float32."""
    position = jnp.arange(0, max_len, dtype=jnp.float32)[:, None]              # (max_len, 1)
    div_term = jnp.exp(
        jnp.arange(0, d_model, 2, dtype=jnp.float32) * (-math.log(10000.0) / d_model)
    )                                                                           # (d_model//2,)
    pe = jnp.zeros((max_len, d_model), dtype=jnp.float32)
    pe = pe.at[:, 0::2].set(jnp.sin(position * div_term))
    pe = pe.at[:, 1::2].set(jnp.cos(position * div_term))
    return pe[None, :, :]                                                       # (1, max_len, d_model)


def init_positional_encoding(d_model: int, max_len: int = 5000):
    """register_buffer equivalent: pe built and flattened ONCE, not per forward."""
    pe = _build_pe(d_model, max_len)
    return {
        "pe": pe,                                           # (1, max_len, d_model) — for reference
        "pe_flat": pe.reshape(1, max_len * d_model),        # lane-dense flat buffer for the kernel
        "d_model": d_model,
        "max_len": max_len,
    }


# ---------------------------------------------------------------------------
# Kernel
# ---------------------------------------------------------------------------
def _add_pe_kernel(x_ref, pe_ref, o_ref):
    # x_ref: (B, TF) tile; pe_ref: (1, TF) tile broadcast over rows.
    # Promotion/cast happens here (free VPU slack in a mem-bound kernel).
    o_ref[...] = (x_ref[...] + pe_ref[...]).astype(o_ref.dtype)


# ---------------------------------------------------------------------------
# Tile sizing with (8,128)-padded, double-buffered VMEM accounting
# ---------------------------------------------------------------------------
def _round_up(x: int, m: int) -> int:
    return -(-x // m) * m


def _round_down(x: int, m: int) -> int:
    return (x // m) * m


def _pick_col_tile(
    F: int,
    B: int,
    x_bytes: int,
    out_bytes: int,
    pe_bytes: int,
    vmem_budget_bytes: int = 16 << 20,   # padded + double-buffered working set budget
    min_grid_steps: int = 8,             # give big problems several steps (pipeline / 2 TCs on v7x)
    min_cols: int = 8192,                # never split below this (tiny tiles fall off the roofline)
) -> int:
    """Lane-dense (multiple-of-128) column tile width TF for the (B, F) view."""
    f_ceil = _round_up(max(F, 1), 128)
    pad_b = _round_up(max(B, 1), 8)
    # VMEM bytes per tile column: x + out blocks padded to ceil(B/8)*8 sublanes,
    # pe (1, TF) block padded to 8 sublanes, all double-buffered (x2).
    per_col = 2 * (pad_b * (x_bytes + out_bytes) + 8 * pe_bytes)
    tf_vmem = max(128, _round_down(vmem_budget_bytes // per_col, 128))
    tf = min(f_ceil, tf_vmem)
    # For large F, cap TF so the 1-D grid gets >= min_grid_steps steps, but never
    # shrink below min_cols columns.
    grid_cap = max(min_cols, _round_down(f_ceil // min_grid_steps, 128))
    tf = min(tf, grid_cap)
    return max(tf, 128)


# ---------------------------------------------------------------------------
# Forward
# ---------------------------------------------------------------------------
def positional_encoding_forward(x: jnp.ndarray, params) -> jnp.ndarray:
    """x: (B, S, D). Returns x + pe[:, :S] with PyTorch-style dtype promotion."""
    B, S, D = x.shape
    assert D == params["d_model"], "d_model mismatch between x and pe"
    assert S <= params["max_len"], f"sequence length {S} exceeds max_len {params['max_len']}"

    pe_flat = params["pe_flat"]                      # (1, max_len*D) float32, built at init
    out_dtype = jnp.promote_types(x.dtype, pe_flat.dtype)

    F = S * D
    x2 = x.reshape(B, F)                             # lane-dense flat view of activations

    x_bytes = jnp.dtype(x.dtype).itemsize
    out_bytes = jnp.dtype(out_dtype).itemsize
    pe_bytes = jnp.dtype(pe_flat.dtype).itemsize
    tf = _pick_col_tile(F, B, x_bytes, out_bytes, pe_bytes)
    grid = (pl.cdiv(F, tf),)

    # NOTE: pe_flat is longer than F; only the first ceil(F/TF) column tiles are
    # DMA'd, and any columns >= F in the ragged last block never reach HBM because
    # the output store is masked to the (B, F) extent.
    out2 = pl.pallas_call(
        _add_pe_kernel,
        out_shape=jax.ShapeDtypeStruct((B, F), out_dtype),
        grid_spec=pltpu.PrefetchScalarGridSpec(
            num_scalar_prefetch=0,
            grid=grid,
            in_specs=[
                pl.BlockSpec((B, tf), lambda j: (0, j)),   # x: full batch, tile over F
                pl.BlockSpec((1, tf), lambda j: (0, j)),   # pe: fetched once per F-tile
            ],
            out_specs=pl.BlockSpec((B, tf), lambda j: (0, j)),
        ),
        compiler_params=pltpu.CompilerParams(
            dimension_semantics=("parallel",),
            vmem_limit_bytes=32 << 20,                     # >= padded double-buffered working set
        ),
        cost_estimate=pl.CostEstimate(
            flops=B * F,
            transcendentals=0,
            bytes_accessed=B * F * x_bytes + F * pe_bytes + B * F * out_bytes,
        ),
        # input_output_aliases={0: 0} in production when the caller donates x.
    )(x2, pe_flat)

    return out2.reshape(B, S, D)


# ---------------------------------------------------------------------------
# Test
# ---------------------------------------------------------------------------
if __name__ == "__main__":
    key = jax.random.PRNGKey(0)

    # Primary test: shapes consistent with the module (batch=2, seq=8, hidden=32).
    d_model, max_len = 32, 5000
    B, S = 2, 8
    x = jax.random.normal(key, (B, S, d_model), dtype=jnp.float32)
    params = init_positional_encoding(d_model, max_len)

    ref = x + params["pe"][:, :S, :]                 # pure-JAX reference
    out = positional_encoding_forward(x, params)
    out = jax.block_until_ready(out)
    assert out.shape == (B, S, d_model)
    assert out.dtype == ref.dtype
    assert jnp.allclose(out, ref, atol=1e-6), "mismatch vs reference (aligned case)"

    # Secondary test: non-128-aligned flattened axis exercises the masked ragged block.
    d_model2, S2 = 10, 3
    params2 = init_positional_encoding(d_model2, 64)
    x2 = jax.random.normal(jax.random.PRNGKey(1), (B, S2, d_model2), dtype=jnp.float32)
    ref2 = x2 + params2["pe"][:, :S2, :]
    out2 = jax.block_until_ready(positional_encoding_forward(x2, params2))
    assert jnp.allclose(out2, ref2, atol=1e-6), "mismatch vs reference (ragged case)"

    print("KERNEL_OK")
</pallas_src>

<mosaic_0001>
module attributes {stable_mosaic.version = 11 : i64} {
  func.func @_add_pe_kernel(%arg0: i32, %arg1: memref<2x256xf32, #tpu.memory_space<vmem>>, %arg2: memref<1x256xf32, #tpu.memory_space<vmem>>, %arg3: memref<2x256xf32, #tpu.memory_space<vmem>>) attributes {dimension_semantics = [#tpu.dimension_semantics<parallel>], iteration_bounds = array<i64: 1>, scalar_prefetch = 0 : i64, scratch_operands = 0 : i64, tpu.core_type = #tpu.core_type<tc>, window_params = [{transform_indices = @transform_0, window_bounds = array<i64: 2, 256>}, {transform_indices = @transform_1, window_bounds = array<i64: 1, 256>}, {transform_indices = @transform_2, window_bounds = array<i64: 2, 256>}]} {
    %c0 = arith.constant 0 : index
    %c0_0 = arith.constant 0 : index
    %0 = vector.load %arg1[%c0, %c0_0] : memref<2x256xf32, #tpu.memory_space<vmem>>, vector<2x256xf32>
    %c0_1 = arith.constant 0 : index
    %c0_2 = arith.constant 0 : index
    %1 = vector.load %arg2[%c0_1, %c0_2] : memref<1x256xf32, #tpu.memory_space<vmem>>, vector<1x256xf32>
    %2 = vector.broadcast %1 : vector<1x256xf32> to vector<2x256xf32>
    %3 = arith.addf %0, %2 : vector<2x256xf32>
    %c0_3 = arith.constant 0 : index
    %c0_4 = arith.constant 0 : index
    %4 = vector.load %arg3[%c0_3, %c0_4] : memref<2x256xf32, #tpu.memory_space<vmem>>, vector<2x256xf32>
    tpu.vector_store %arg3[%c0_3, %c0_4], %3 {strides = array<i32>} : memref<2x256xf32, #tpu.memory_space<vmem>>, vector<2x256xf32>,
    return
  }
  func.func @transform_0(%arg0: i32) -> (i32, i32) {
    %c0_i32 = arith.constant 0 : i32
    %c0_i32_0 = arith.constant 0 : i32
    return %c0_i32, %arg0 : i32, i32
  }
  func.func @transform_1(%arg0: i32) -> (i32, i32) {
    %c0_i32 = arith.constant 0 : i32
    %c0_i32_0 = arith.constant 0 : i32
    return %c0_i32, %arg0 : i32, i32
  }
  func.func @transform_2(%arg0: i32) -> (i32, i32) {
    %c0_i32 = arith.constant 0 : i32
    %c0_i32_0 = arith.constant 0 : i32
    return %c0_i32, %arg0 : i32, i32
  }
}

</mosaic_0001>

<bundles_post_ra>
// kernel: tpu_custom_call.1
= control target key start
LH: loop header
LB: loop body
LE: loop exit
PB: predicated region body
PF: predicated region fallthrough
CT: control target
= control target key end

     0   :  { %7 = vsyncpa [#allocation3], 0  ;;  %s215_s0 = inlined_call_operand.hbm [shape: f32[2,256], index: 0, kind: input, shape index: {}]   ;;  %s216_s1 = inlined_call_operand.hbm [shape: f32[1,160000], index: 1, kind: input, shape index: {}]   ;;  %s217_s2 = inlined_call_operand.hbm [shape: f32[2,256], index: 2, kind: output, shape index: {}]  }
   0x1   :  { %8 = vsyncpa [#allocation6], 0 }
   0x2   :  { %9 = vsyncpa [#allocation4], 0  ;;  %s150_s9 = smov [#allocation2]   ;;  %s151_s11 = smov [#allocation5]  }
   0x3   :  { %s16_s10 = sshll.u32 %s150_s9, 4  ;;  %s26_s12 = sshll.u32 %s151_s11, 4  ;;  %s17_s10 = int_to_ptr.vmem [resolvable:$true] %s16_s10  ;;  %s169_s12 = int_to_ptr.vmem [resolvable:$true] %s26_s12 }
   0x4   :  { %s78_s15 = scalar_lea.hbm %s215_s0, 64 }
   0x5   :  { %p79_p0 = scmp.ne.s32.totalorder %s215_s0, %s78_s15  ;;  %p82_p1 = scmp.lt.u32.totalorder %s78_s15, %s215_s0 }
   0x7   :  { %p84_p2 = pnand %p82_p1, %p79_p0 }
   0x9   :  { %87 = shalt.err (!%p84_p2)
}
   0xa   :  { %s88_s20 = scalar_lea.vmem %s17_s10, 64  ;;  %p93_p4 = scmp.lt.s32.totalorder %s17_s10, %s17_s10 }
   0xb   :  { %p89_p3 = scmp.ne.s32.totalorder %s17_s10, %s88_s20  ;;  %p94_p5 = scmp.lt.s32.totalorder %s88_s20, %s88_s20 }
   0xd   :  { %p95_p6 = por %p94_p5, %p93_p4 }
   0xf   :  { %p96_p7 = pnand %p95_p6, %p89_p3 }
  0x11   :  { %99 = shalt.err (!%p96_p7)
}
  0x12   :  { %19 = dma.hbm_to_vmem [thread:$0]  %s215_s0, 64, %s17_s10, [#allocation3]  }
  0x13   :  { %s100_s25 = scalar_lea.hbm %s216_s1, 32  ;;  %s102_s30 = scalar_lea.hbm %s216_s1, 20000 }
  0x14   :  { %p101_p8 = scmp.ne.s32.totalorder %s216_s1, %s100_s25  ;;  %p103_p9 = scmp.lt.u32.totalorder %s102_s30, %s100_s25 }
  0x15   :  { %p104_p10 = scmp.lt.u32.totalorder %s100_s25, %s216_s1 }
  0x17   :  { %p105_p11 = por %p104_p10, %p103_p9 }
  0x19   :  { %p106_p12 = pnand %p105_p11, %p101_p8 }
  0x1b   :  { %109 = shalt.err (!%p106_p12)
}
  0x1c   :  { %s110_s0 = scalar_lea.vmem %s169_s12, 32  ;;  %p115_p0 = scmp.lt.s32.totalorder %s169_s12, %s169_s12 }
  0x1d   :  { %p111_p13 = scmp.ne.s32.totalorder %s169_s12, %s110_s0  ;;  %p116_p1 = scmp.lt.s32.totalorder %s110_s0, %s110_s0 }
  0x1f   :  { %p117_p2 = por %p116_p1, %p115_p0 }
  0x21   :  { %p118_p3 = pnand %p117_p2, %p111_p13 }
  0x23   :  { %121 = shalt.err (!%p118_p3)
}
  0x24   :  { %29 = dma.hbm_to_vmem [thread:$0]  %s216_s1, 32, %s169_s12, [#allocation6]  }
  0x25   :  { %144 = dma.done.wait [#allocation3], 64  }
  0x26   :  { %145 = vsyncadd [#allocation3], 4294967232 }
  0x27   :  { %146 = dma.done.wait [#allocation6], 32  }
  0x28   :  { %147 = vsyncadd [#allocation6], 4294967264  ;;  %v39_v0 = vlaneseq  ;;  %v152_v1 = vmov 1983009808   ;;  %v37_v7 = vld [vmem:[#allocation5] sm:$0x3] }
  0x29   :  { %v49_v2 = vunpack.c.l.s4 %v152_v1  ;;  %v36_v12 = vld [vmem:[#allocation2] sm:$0xf]  ;;  %s153_s7 = smov [#allocation7]  }
  0x2a   :  { %v40_v3 = vshrl.u32 %v39_v0, 7  ;;  %s64_s8 = sshll.u32 %s153_s7, 4  ;;  %s65_s8 = int_to_ptr.vmem [resolvable:$true] %s64_s8 }
  0x2b   :  { %v50_v6 = vunpack.c.0.s8 %v49_v2  ;;  %s122_s1 = scalar_lea.vmem %s65_s8, 64  ;;  %p127_p5 = scmp.lt.s32.totalorder %s65_s8, %s65_s8 }
  0x2c   :  { %v41_v4 = vsub.s32 0, %v40_v3  ;;  %v45_v5 = vsub.s32 1, %v40_v3  ;;  %p123_p4 = scmp.ne.s32.totalorder %s65_s8, %s122_s1  ;;  %p128_p6 = scmp.lt.s32.totalorder %s122_s1, %s122_s1 }
  0x2d   :  { %v53_v10 = vsub.s32 %v50_v6, %v40_v3 }
  0x2e   :  { %v42_v8 = vrot.slane %v37_v7, %v41_v4  ;;  %v46_v9 = vrot.slane %v37_v7, %v45_v5  ;;  %p129_p7 = por %p128_p6, %p127_p5 }
  0x30   :  { %v47_v11 = vcombine.low %v42_v8, %v46_v9  ;;  %p130_p8 = pnand %p129_p7, %p123_p4 }
  0x32   :  { %v54_v13 = vrot.slane %v47_v11, %v53_v10 }
  0x34   :  { %v56_v14 = vadd.f32 %v54_v13, %v36_v12 }
  0x36   :  { %57 = vst [vmem:[#allocation7] sm:$0xf] %v56_v14 }
  0x37   :  { %133 = shalt.err (!%p130_p8)
}
  0x38   :  { %s134_s11 = scalar_lea.hbm %s217_s2, 64 }
  0x39   :  { %p135_p9 = scmp.ne.s32.totalorder %s217_s2, %s134_s11  ;;  %p138_p10 = scmp.lt.u32.totalorder %s134_s11, %s217_s2 }
  0x3b   :  { %p140_p11 = pnand %p138_p10, %p135_p9 }
  0x3d   :  { %143 = shalt.err (!%p140_p11)
}
  0x3e   :  { %67 = dma.vmem_to_hbm [thread:$0]  %s65_s8, 64, %s217_s2, [#allocation4]  }
  0x3f   :  { %148 = dma.done.wait [#allocation4], 64  }
  0x40   :  { %149 = vsyncadd [#allocation4], 4294967232 }
  0x41   :  { %71 = vsyncpa [#allocation3], 1 }
  0x42   :  { %72 = vsyncpa [#allocation6], 1 }
  0x43   :  { %73 = vsyncpa [#allocation4], 1 }

</bundles_post_ra>
